<compile_context>
chip_gen: v5e
topology: v5e:2x2
jax: 0.10.0
libtpu: 0.0.40
codegen_flags: <defaults>
</compile_context>

<pallas_src>
import functools
import math

import jax
import jax.numpy as jnp
from jax.experimental import pallas as pl
from jax.experimental.pallas import tpu as pltpu


def _ohem_ce_kernel(x_ref, lab_ref, loss_ref, sum_ref, cnt_ref, *,
                    ignore_lb, thresh_val, p, tile):
    """One lane tile of pixels per grid step.

    x_ref:    (N, C, T) logits tile (streamed dtype, upcast to f32 here)
    lab_ref:  (N, T)    int32 labels tile
    loss_ref: (N, T)    f32 per-pixel CE (0 at ignored / out-of-range pixels)
    sum_ref:  (1, 1, 128) per-tile partial sum  of losses > thresh (broadcast)
    cnt_ref:  (1, 1, 128) per-tile partial count of losses > thresh (broadcast)
    """
    x = x_ref[...].astype(jnp.float32)            # (N, C, T)
    lbl = lab_ref[...]                            # (N, T)

    # Numerically stable log-softmax pieces; reuse the shifted logits so only one
    # (N, C, T) f32 temporary is live besides exp's input.
    m = jnp.max(x, axis=1, keepdims=True)         # (N, 1, T)
    xm = x - m                                    # (N, C, T)
    lse = jnp.log(jnp.sum(jnp.exp(xm), axis=1))   # (N, T)

    # Gather the shifted logit at the label channel via a one-hot sublane sum.
    cls = jax.lax.broadcasted_iota(jnp.int32, x.shape, 1)
    onehot = cls == lbl[:, None, :]
    picked = jnp.sum(jnp.where(onehot, xm, 0.0), axis=1)    # (N, T)

    # Mask the ragged tail (cdiv grid, no HBM padding) by pixel index, and the
    # ignore_index pixels.  Masked pixels get loss 0, matching PyTorch CE with
    # reduction='none' (which also emits 0 at ignored pixels).
    pix = pl.program_id(0) * tile + jax.lax.broadcasted_iota(jnp.int32, lbl.shape, 1)
    in_bounds = pix < p
    valid = (lbl != ignore_lb) & in_bounds
    loss = jnp.where(valid, lse - picked, 0.0)               # (N, T)
    loss_ref[...] = loss

    # Fused OHEM pre-reduction: per-tile sum/count of losses strictly above thresh.
    keep = (loss > thresh_val) & in_bounds

    def _partial_block(v):                        # (N, T) f32 -> (1, 1, 128)
        r = jnp.sum(v, axis=1, keepdims=True)     # cross-lane reduce  -> (N, 1)
        r = jnp.sum(r, axis=0, keepdims=True)     # cross-sublane      -> (1, 1)
        return jnp.broadcast_to(r[:, :, None], (1, 1, 128))

    sum_ref[...] = _partial_block(jnp.where(keep, loss, 0.0))
    cnt_ref[...] = _partial_block(keep.astype(jnp.float32))


def _ohem_ce_partials(logits, labels, thresh_val, ignore_lb=255):
    """Pallas CE + fused >thresh partial sums/counts.

    Returns (loss_flat (N*H*W,), per_tile_sums, per_tile_counts).
    """
    n, c, h, w = logits.shape
    p = h * w
    x = logits.reshape(n, c, p)                   # free trailing-dim merge, keeps dtype
    lbl = labels.reshape(n, p).astype(jnp.int32)

    # Fixed large lane tile; ragged tail handled in-kernel (no jnp.pad HBM pass).
    # v7x has 2 TensorCores: for tiny inputs shrink the tile so the "parallel"
    # grid has >=2 steps (irrelevant for real shapes where tile stays at 1024).
    tile = 1024
    while tile > 128 and pl.cdiv(p, tile) < 2:
        tile //= 2
    num_tiles = pl.cdiv(p, tile)

    kernel = functools.partial(
        _ohem_ce_kernel,
        ignore_lb=ignore_lb, thresh_val=float(thresh_val), p=p, tile=tile)

    loss, sums, cnts = pl.pallas_call(
        kernel,
        out_shape=(
            jax.ShapeDtypeStruct((n, p), jnp.float32),
            jax.ShapeDtypeStruct((num_tiles, 1, 128), jnp.float32),
            jax.ShapeDtypeStruct((num_tiles, 1, 128), jnp.float32),
        ),
        grid=(num_tiles,),
        in_specs=[
            pl.BlockSpec((n, c, tile), lambda t: (0, 0, t)),
            pl.BlockSpec((n, tile), lambda t: (0, t)),
        ],
        out_specs=(
            pl.BlockSpec((n, tile), lambda t: (0, t)),
            pl.BlockSpec((1, 1, 128), lambda t: (t, 0, 0)),
            pl.BlockSpec((1, 1, 128), lambda t: (t, 0, 0)),
        ),
        compiler_params=pltpu.CompilerParams(
            dimension_semantics=("parallel",),
            # 128 MiB physical VMEM on v5e/v6e, 64 MiB on v7x: 48 MiB scoped keeps
            # the big tile double-buffered without shrinking, with v7x headroom.
            vmem_limit_bytes=48 * 1024 * 1024,
        ),
    )(x, lbl)

    return loss.reshape(-1), sums[:, 0, 0], cnts[:, 0, 0]


def ohem_ce_loss(logits, labels, thresh, n_min, ignore_lb=255):
    """Pallas implementation of OhemCELoss.forward.  Returns a scalar."""
    thresh_val = -math.log(float(thresh))
    loss_flat, sums, cnts = _ohem_ce_partials(logits, labels, thresh_val, ignore_lb)

    sum_gt = jnp.sum(sums)
    cnt_gt = jnp.sum(cnts.astype(jnp.int32))      # per-tile counts are small -> exact

    # srt[n_min] > thresh  <=>  count(loss > thresh) > n_min  (strict on both sides).
    def _mean_gt():
        return sum_gt / cnt_gt.astype(jnp.float32)

    def _mean_topk():
        # TODO(synk): the descending-sort / top-k selection has no clean Pallas TPU
        # equivalent; the rare fallback branch runs lax.top_k on the 1-D loss vector.
        vals, _ = jax.lax.top_k(loss_flat, n_min)
        return jnp.mean(vals)

    return jax.lax.cond(cnt_gt > n_min, _mean_gt, _mean_topk)


def ohem_ce_loss_ref(logits, labels, thresh, n_min, ignore_lb=255):
    """Pure-JAX reference mirroring the PyTorch module exactly."""
    logp = jax.nn.log_softmax(logits.astype(jnp.float32), axis=1)
    valid = labels != ignore_lb
    safe = jnp.where(valid, labels, 0)
    picked = jnp.take_along_axis(logp, safe[:, None, :, :], axis=1)[:, 0]
    ce = jnp.where(valid, -picked, 0.0).reshape(-1)
    thresh_val = -jnp.log(jnp.asarray(thresh, jnp.float32))
    srt = jnp.sort(ce)[::-1]                                 # descending
    kth = srt[n_min]
    keep = ce > thresh_val
    mean_gt = jnp.sum(jnp.where(keep, ce, 0.0)) / jnp.sum(keep).astype(jnp.float32)
    mean_topk = jnp.mean(srt[:n_min])
    return jnp.where(kth > thresh_val, mean_gt, mean_topk)


if __name__ == "__main__":
    key = jax.random.PRNGKey(0)
    k1, k2, k3 = jax.random.split(key, 3)

    # H*W = 384 is not a multiple of the chosen tile -> exercises the masked
    # ragged tail of the cdiv grid.
    N, C, H, W = 2, 4, 16, 24
    logits = jax.random.normal(k1, (N, C, H, W), dtype=jnp.float32) * 2.0
    labels = jax.random.randint(k2, (N, H, W), 0, C, dtype=jnp.int32)
    labels = jnp.where(jax.random.bernoulli(k3, 0.1, (N, H, W)), 255, labels)

    thresh = 0.7

    # Small n_min -> "loss > thresh" (count) branch.
    n_min = (N * H * W) // 16  # 48
    out = jax.block_until_ready(ohem_ce_loss(logits, labels, thresh, n_min))
    ref = jax.block_until_ready(ohem_ce_loss_ref(logits, labels, thresh, n_min))
    assert jnp.allclose(out, ref, rtol=1e-4, atol=1e-4), (out, ref)

    # Large n_min -> top-k fallback branch.
    n_min_big = N * H * W - 8  # 760
    out2 = jax.block_until_ready(ohem_ce_loss(logits, labels, thresh, n_min_big))
    ref2 = jax.block_until_ready(ohem_ce_loss_ref(logits, labels, thresh, n_min_big))
    assert jnp.allclose(out2, ref2, rtol=1e-4, atol=1e-4), (out2, ref2)

    print("KERNEL_OK")
</pallas_src>

<mosaic_0001>
module attributes {stable_mosaic.version = 11 : i64} {
  func.func @_ohem_ce_kernel(%arg0: i32, %arg1: memref<2x4x256xf32, #tpu.memory_space<vmem>>, %arg2: memref<2x256xi32, #tpu.memory_space<vmem>>, %arg3: memref<2x256xf32, #tpu.memory_space<vmem>>, %arg4: memref<1x1x128xf32, #tpu.memory_space<vmem>>, %arg5: memref<1x1x128xf32, #tpu.memory_space<vmem>>) attributes {dimension_semantics = [#tpu.dimension_semantics<parallel>], iteration_bounds = array<i64: 2>, scalar_prefetch = 0 : i64, scratch_operands = 0 : i64, tpu.core_type = #tpu.core_type<tc>, window_params = [{transform_indices = @transform_0, window_bounds = array<i64: 2, 4, 256>}, {transform_indices = @transform_1, window_bounds = array<i64: 2, 256>}, {transform_indices = @transform_2, window_bounds = array<i64: 2, 256>}, {transform_indices = @transform_3, window_bounds = array<i64: 1, 1, 128>}, {transform_indices = @transform_4, window_bounds = array<i64: 1, 1, 128>}]} {
    %c0 = arith.constant 0 : index
    %c0_0 = arith.constant 0 : index
    %c0_1 = arith.constant 0 : index
    %0 = vector.load %arg1[%c0, %c0_0, %c0_1] : memref<2x4x256xf32, #tpu.memory_space<vmem>>, vector<2x4x256xf32>
    %c0_2 = arith.constant 0 : index
    %c0_3 = arith.constant 0 : index
    %1 = vector.load %arg2[%c0_2, %c0_3] : memref<2x256xi32, #tpu.memory_space<vmem>>, vector<2x256xi32>
    %cst = arith.constant dense<0xFF800000> : vector<2x256xf32>
    %2 = vector.multi_reduction <maximumf>, %0, %cst [1] : vector<2x4x256xf32> to vector<2x256xf32>
    %3 = vector.shape_cast %2 : vector<2x256xf32> to vector<2x1x256xf32>
    %4 = vector.broadcast %3 : vector<2x1x256xf32> to vector<2x4x256xf32>
    %5 = arith.subf %0, %4 : vector<2x4x256xf32>
    %6 = math.exp %5 : vector<2x4x256xf32>
    %cst_4 = arith.constant dense<0.000000e+00> : vector<2x256xf32>
    %7 = vector.multi_reduction <add>, %6, %cst_4 [1] : vector<2x4x256xf32> to vector<2x256xf32>
    %8 = math.log %7 : vector<2x256xf32>
    %9 = tpu.iota {dimensions = array<i32: 1>} : vector<2x4x256xi32>
    %10 = vector.shape_cast %1 : vector<2x256xi32> to vector<2x1x256xi32>
    %11 = vector.broadcast %10 : vector<2x1x256xi32> to vector<2x4x256xi32>
    %12 = arith.cmpi eq, %9, %11 : vector<2x4x256xi32>
    %cst_5 = arith.constant 0.000000e+00 : f32
    %13 = vector.broadcast %cst_5 : f32 to vector<2x4x256xf32>
    %14 = arith.select %12, %5, %13 : vector<2x4x256xi1>, vector<2x4x256xf32>
    %cst_6 = arith.constant dense<0.000000e+00> : vector<2x256xf32>
    %15 = vector.multi_reduction <add>, %14, %cst_6 [1] : vector<2x4x256xf32> to vector<2x256xf32>
    %c256_i32 = arith.constant 256 : i32
    %16 = arith.muli %arg0, %c256_i32 : i32
    %17 = tpu.iota {dimensions = array<i32: 1>} : vector<2x256xi32>
    %18 = vector.broadcast %16 : i32 to vector<2x256xi32>
    %19 = arith.addi %18, %17 : vector<2x256xi32>
    %c384_i32 = arith.constant 384 : i32
    %20 = vector.broadcast %c384_i32 : i32 to vector<2x256xi32>
    %21 = arith.cmpi slt, %19, %20 : vector<2x256xi32>
    %c255_i32 = arith.constant 255 : i32
    %22 = vector.broadcast %c255_i32 : i32 to vector<2x256xi32>
    %23 = arith.cmpi ne, %1, %22 : vector<2x256xi32>
    %24 = arith.andi %23, %21 : vector<2x256xi1>
    %25 = arith.subf %8, %15 : vector<2x256xf32>
    %cst_7 = arith.constant 0.000000e+00 : f32
    %26 = vector.broadcast %cst_7 : f32 to vector<2x256xf32>
    %27 = arith.select %24, %25, %26 : vector<2x256xi1>, vector<2x256xf32>
    %c0_8 = arith.constant 0 : index
    %c0_9 = arith.constant 0 : index
    %28 = vector.load %arg3[%c0_8, %c0_9] : memref<2x256xf32, #tpu.memory_space<vmem>>, vector<2x256xf32>
    tpu.vector_store %arg3[%c0_8, %c0_9], %27 {strides = array<i32>} : memref<2x256xf32, #tpu.memory_space<vmem>>, vector<2x256xf32>,
    %cst_10 = arith.constant 0.356674939 : f32
    %29 = vector.broadcast %cst_10 : f32 to vector<2x256xf32>
    %30 = arith.cmpf ogt, %27, %29 : vector<2x256xf32>
    %31 = arith.andi %30, %21 : vector<2x256xi1>
    %cst_11 = arith.constant 0.000000e+00 : f32
    %32 = vector.broadcast %cst_11 : f32 to vector<2x256xf32>
    %33 = arith.select %31, %27, %32 : vector<2x256xi1>, vector<2x256xf32>
    %cst_12 = arith.constant dense<0.000000e+00> : vector<2xf32>
    %34 = vector.multi_reduction <add>, %33, %cst_12 [1] : vector<2x256xf32> to vector<2xf32>
    %35 = vector.shape_cast %34 : vector<2xf32> to vector<2x1xf32>
    %cst_13 = arith.constant dense<0.000000e+00> : vector<1xf32>
    %36 = vector.multi_reduction <add>, %35, %cst_13 [0] : vector<2x1xf32> to vector<1xf32>
    %37 = vector.shape_cast %36 : vector<1xf32> to vector<1x1xf32>
    %38 = vector.shape_cast %37 : vector<1x1xf32> to vector<1x1x1xf32>
    %39 = vector.shape_cast %38 : vector<1x1x1xf32> to vector<1x1x1xf32>
    %40 = vector.broadcast %39 : vector<1x1x1xf32> to vector<1x1x128xf32>
    %c0_14 = arith.constant 0 : index
    %c0_15 = arith.constant 0 : index
    %c0_16 = arith.constant 0 : index
    %41 = vector.load %arg4[%c0_14, %c0_15, %c0_16] : memref<1x1x128xf32, #tpu.memory_space<vmem>>, vector<1x1x128xf32>
    tpu.vector_store %arg4[%c0_14, %c0_15, %c0_16], %40 {strides = array<i32>} : memref<1x1x128xf32, #tpu.memory_space<vmem>>, vector<1x1x128xf32>,
    %42 = arith.extui %31 : vector<2x256xi1> to vector<2x256xi32>
    %43 = arith.sitofp %42 : vector<2x256xi32> to vector<2x256xf32>
    %cst_17 = arith.constant dense<0.000000e+00> : vector<2xf32>
    %44 = vector.multi_reduction <add>, %43, %cst_17 [1] : vector<2x256xf32> to vector<2xf32>
    %45 = vector.shape_cast %44 : vector<2xf32> to vector<2x1xf32>
    %cst_18 = arith.constant dense<0.000000e+00> : vector<1xf32>
    %46 = vector.multi_reduction <add>, %45, %cst_18 [0] : vector<2x1xf32> to vector<1xf32>
    %47 = vector.shape_cast %46 : vector<1xf32> to vector<1x1xf32>
    %48 = vector.shape_cast %47 : vector<1x1xf32> to vector<1x1x1xf32>
    %49 = vector.shape_cast %48 : vector<1x1x1xf32> to vector<1x1x1xf32>
    %50 = vector.broadcast %49 : vector<1x1x1xf32> to vector<1x1x128xf32>
    %c0_19 = arith.constant 0 : index
    %c0_20 = arith.constant 0 : index
    %c0_21 = arith.constant 0 : index
    %51 = vector.load %arg5[%c0_19, %c0_20, %c0_21] : memref<1x1x128xf32, #tpu.memory_space<vmem>>, vector<1x1x128xf32>
    tpu.vector_store %arg5[%c0_19, %c0_20, %c0_21], %50 {strides = array<i32>} : memref<1x1x128xf32, #tpu.memory_space<vmem>>, vector<1x1x128xf32>,
    return
  }
  func.func @transform_0(%arg0: i32) -> (i32, i32, i32) {
    %c0_i32 = arith.constant 0 : i32
    %c0_i32_0 = arith.constant 0 : i32
    %c0_i32_1 = arith.constant 0 : i32
    return %c0_i32, %c0_i32_0, %arg0 : i32, i32, i32
  }
  func.func @transform_1(%arg0: i32) -> (i32, i32) {
    %c0_i32 = arith.constant 0 : i32
    %c0_i32_0 = arith.constant 0 : i32
    return %c0_i32, %arg0 : i32, i32
  }
  func.func @transform_2(%arg0: i32) -> (i32, i32) {
    %c0_i32 = arith.constant 0 : i32
    %c0_i32_0 = arith.constant 0 : i32
    return %c0_i32, %arg0 : i32, i32
  }
  func.func @transform_3(%arg0: i32) -> (i32, i32, i32) {
    %c0_i32 = arith.constant 0 : i32
    %c0_i32_0 = arith.constant 0 : i32
    %c0_i32_1 = arith.constant 0 : i32
    return %arg0, %c0_i32, %c0_i32_0 : i32, i32, i32
  }
  func.func @transform_4(%arg0: i32) -> (i32, i32, i32) {
    %c0_i32 = arith.constant 0 : i32
    %c0_i32_0 = arith.constant 0 : i32
    %c0_i32_1 = arith.constant 0 : i32
    return %arg0, %c0_i32, %c0_i32_0 : i32, i32, i32
  }
}

</mosaic_0001>

<bundles_post_ra>
// kernel: tpu_custom_call.1
= control target key start
LH: loop header
LB: loop body
LE: loop exit
PB: predicated region body
PF: predicated region fallthrough
CT: control target
= control target key end

     0   :  { %s1463_s0 = inlined_call_operand.hbm [shape: f32[2,4,384], index: 0, kind: input, shape index: {}]   ;;  %s1464_s1 = inlined_call_operand.hbm [shape: s32[2,384], index: 1, kind: input, shape index: {}]   ;;  %s1465_s2 = inlined_call_operand.hbm [shape: f32[2,384], index: 2, kind: output, shape index: {0}]   ;;  %s1466_s3 = inlined_call_operand.hbm [shape: f32[2,1,128], index: 3, kind: output, shape index: {1}]   ;;  %s1467_s4 = inlined_call_operand.hbm [shape: f32[2,1,128], index: 4, kind: output, shape index: {2}]  }
   0x1   :  { %1475 = sst [smem:[#allocation15_spill]] %s1463_s0 }
   0x2   :  { %10 = vsyncpa [#allocation3], 0 }
   0x3   :  { %12 = vsyncpa [#allocation3 + $0x1], 0 }
   0x4   :  { %13 = vsyncpa [#allocation6], 0 }
   0x5   :  { %15 = vsyncpa [#allocation6 + $0x1], 0 }
   0x6   :  { %16 = vsyncpa [#allocation4], 0 }
   0x7   :  { %18 = vsyncpa [#allocation4 + $0x1], 0 }
   0x8   :  { %19 = vsyncpa [#allocation9], 0 }
   0x9   :  { %21 = vsyncpa [#allocation9 + $0x1], 0  ;;  %s1131_s15 = smov 0   ;;  %s1133_s16 = smov 0  }
   0xa   :  { %s1135_s17 = smov 0   ;;  %s1137_s18 = smov 0  }
   0xb LB: > { %s1152_s19 = sadd.s32 4294967295, %s1097_s18   ;;  %s1468_s20 = sadd.s32 4294967294, %s1097_s18   ;;  %s1097_s18 = sphi %s1137_s18, %s1500_s18   ;;  %s1093_s17 = sphi %s1135_s17, %s1499_s17   ;;  %s1089_s16 = sphi %s1133_s16, %s1498_s16   ;;  %s1085_s15 = sphi %s1131_s15, %s1497_s15  }
   0xc   : > { %s1156_s21 = sadd.s32 1, %s1097_s18   ;;  %s34_s22 = sadd.s32 1, %s1093_s17 }
   0xd   : > { %s31_s23 = ssub.s32 %s1097_s18, %s1156_s21  ;;  %p41_p0 = scmp.ne.s32.totalorder %s1093_s17, %s1089_s16 }
   0xe   : > { %p32_p1 = scmp.eq.s32.totalorder %s31_s23, 0  ;;  %p42_p2 = scmp.eq.s32.totalorder %s1097_s18, 0 }
   0xf   : > { %p47_p3 = scmp.ne.s32.totalorder %s1089_s16, %s1085_s15  ;;  %p48_p4 = scmp.eq.s32.totalorder %s1152_s19, 0 }
  0x10   : > { %s1168_s24 = scalar_select %p32_p1, %s1093_s17, %s34_s22  }
  0x11   : > { %p1170_p5 = por %p42_p2, %p41_p0  ;;  %p1174_p6 = por %p48_p4, %p47_p3 }
  0x12   : > { %p97_p7 = scmp.eq.s32.totalorder %s1152_s19, 1  ;;  %p103_p8 = scmp.eq.s32.totalorder %s1468_s20, 1 }
  0x13   : > { %p1470_p11 = scmp.ge.s32.totalorder %s1097_s18, 2 }
  0x14   : > { %p1181_p9 = por %p97_p7, %p41_p0  ;;  %p1185_p10 = por %p103_p8, %p47_p3 }
  0x15   : > { %171 = sbr.rel (%p1470_p11) target bundleno = 105 (0x69), region = 16 }
  0x16   : > { %s1479_s28 = scalar_select %p1185_p10, 1, 0 }
  0x1a   : > { %174 = sbr.rel (!%p1170_p5) target bundleno = 69 (0x45), region = 20  ;;  %s175_s29 = sand.u32 (%p1170_p5), 1, %s1093_s17  }
  0x1b   : > { %s778_s30 = sshll.u32 (%p1170_p5), %s1097_s18, 1  ;;  %s777_s5 = sshll.u32 (%p1170_p5), %s175_s29, 4 }
  0x1c   : > { %s181_s6 = ssub.s32 (%p1170_p5), 3, %s778_s30  ;;  %s1199_s10 = scalar_lea.sflag (%p1170_p5), [#allocation3], %s175_s29 }
  0x1d   : > { %p182_p12 = scmp.lt.s32.totalorder (%p1170_p5), %s181_s6, 2  ;;  %s179_s11 = scalar_lea.vmem (%p1170_p5), [#allocation2], %s777_s5 }
  0x1f   : > { %s1502_s6 = smov (!%p182_p12, %s181_s6), 2 }
  0x20   : > { %s779_s7 = sshll.u32 %s1502_s6, 3 }
  0x21   : > { %s185_s8 = ssub.s32 16, %s779_s7 }
  0x22   : > { %s186_s9 = sshll.u32 %s185_s8, 4 }
  0x23   : > { %187 = vsyncadd %s1199_s10, %s186_s9  ;;  %p1202_p13 = scmp.ne.s32.totalorder %s779_s7, 0  ;;  %s807_s13 = sshll.u32 %s1097_s18, 3 }
  0x24   : > { %s1481_s0 = sld [smem:[#allocation15_spill]]  ;;  %s1211_s8 = sshll.u32 %s179_s11, 4  ;;  %s196_s8 = int_to_ptr.vmem [resolvable:$true] %s1211_s8 }
  0x25   : > { %s1469_s5 = sshll.u32 %s1502_s6, 7 }
  0x26   : > { %s880_s9 = sshrl.u32 %s1469_s5, 4 }
  0x2a   : > { %s190_s23 = scalar_lea.hbm %s1481_s0, %s807_s13  ;;  %s889_s11 = scalar_lea.hbm %s1481_s0, 24 }
  0x2b   : > { %s193_s29 = sshll.u32 %s190_s23, 4  ;;  %s1213_s29 = int_to_ptr.hbm [resolvable:$true] %s193_s29 }
  0x2c   : > { %s878_s7 = sshra.s32 %s1213_s29, 4  ;;  %s879_s7 = int_to_ptr.hbm [resolvable:$true] %s878_s7 }
  0x2d   : > { %s885_s20 = scalar_lea.hbm %s879_s7, %s880_s9  ;;  %p890_p3 = scmp.lt.s32.totalorder %s879_s7, %s1481_s0 }
  0x2e   : > { %p886_p0 = scmp.ne.s32.totalorder %s879_s7, %s885_s20  ;;  %p891_p4 = scmp.lt.s32.totalorder %s889_s11, %s885_s20 }
  0x30   : > { %p887_p1 = pnand %p886_p0, %p1202_p13  ;;  %p892_p7 = por %p891_p4, %p890_p3 }
  0x32   : > { %p888_p2 = pneg %p887_p1 }
  0x34   : > { %p893_p8 = pnand %p892_p7, %p888_p2 }
  0x36   : > { %896 = shalt.err (!%p893_p8)
}
  0x37   : > { %s897_s5 = sshra.s32 %s196_s8, 4  ;;  %s1099_s13 = smov [#allocation2]   ;;  %s898_s5 = int_to_ptr.vmem [resolvable:$true] %s897_s5 }
  0x38   : > { %s904_s30 = scalar_lea.vmem %s898_s5, %s880_s9  ;;  %s908_s14 = scalar_lea.vmem %s1099_s13, 32 }
  0x39   : > { %p905_p12 = scmp.ne.s32.totalorder %s898_s5, %s904_s30  ;;  %p910_p11 = scmp.lt.s32.totalorder %s908_s14, %s904_s30 }
  0x3b   : > { %p906_p0 = pnand %p905_p12, %p1202_p13 }
  0x3d   : > { %p907_p1 = pneg %p906_p0 }
  0x3f   : > { %p912_p10 = pnand %p910_p11, %p907_p1 }
  0x41   : > { %915 = shalt.err (!%p912_p10)
}
  0x42   : > { %s1100_s7 = smov 192   ;;  %s1101_s20 = smov 128  }
  0x43   : > { %s1482_s11 = sshll.u32 %s1502_s6, 2  ;;  %s1483_s5 = sshll.u32 %s1502_s6, 7 }
  0x44   : > { %201 = dma.hbm_to_vmem [thread:$0]  (%p1202_p13), %s1213_s29, %s1483_s5, %s196_s8, %s1199_s10, %s1100_s7, %s1101_s20, %s1482_s11  }
  0x45 PF: > { %204 = sbr.rel (!%p1170_p5) target bundleno = 105 (0x69), region = 24  ;;  %s205_s30 = sand.u32 (%p1170_p5), 1, %s1093_s17  }
  0x46   : > { %s786_s9 = sshll.u32 (%p1170_p5), %s1097_s18, 1  ;;  %s785_s22 = sshll.u32 (%p1170_p5), %s205_s30, 2 }
  0x47   : > { %s211_s23 = ssub.s32 (%p1170_p5), 3, %s786_s9  ;;  %s1249_s0 = scalar_lea.sflag (%p1170_p5), [#allocation6], %s205_s30 }
  0x48   : > { %p212_p10 = scmp.lt.s32.totalorder (%p1170_p5), %s211_s23, 2  ;;  %s209_s6 = scalar_lea.vmem (%p1170_p5), [#allocation5], %s785_s22 }
  0x4a   : > { %s1504_s23 = smov (!%p212_p10, %s211_s23), 2 }
  0x4b   : > { %s787_s13 = sshll.u32 %s1504_s23, 1 }
  0x4c   : > { %s215_s12 = ssub.s32 4, %s787_s13 }
  0x4d   : > { %s216_s14 = sshll.u32 %s215_s12, 4 }
  0x4e   : > { %217 = vsyncadd %s1249_s0, %s216_s14  ;;  %p1252_p5 = scmp.ne.s32.totalorder %s787_s13, 0  ;;  %s810_s10 = sshll.u32 %s1097_s18, 2 }
  0x4f   : > { %s220_s7 = scalar_lea.hbm %s1464_s1, %s810_s10  ;;  %s1471_s20 = sshll.u32 %s1504_s23, 5 }
  0x50   : > { %s223_s11 = sshll.u32 %s220_s7, 4  ;;  %s1261_s5 = sshll.u32 %s209_s6, 4  ;;  %s224_s11 = int_to_ptr.hbm [resolvable:$true] %s223_s11  ;;  %s226_s5 = int_to_ptr.vmem [resolvable:$true] %s1261_s5 }
  0x51   : > { %s917_s30 = sshra.s32 %s224_s11, 4  ;;  %s919_s9 = sshrl.u32 %s1471_s20, 4  ;;  %s918_s30 = int_to_ptr.hbm [resolvable:$true] %s917_s30 }
  0x52   : > { %s924_s22 = scalar_lea.hbm %s918_s30, %s919_s9  ;;  %s928_s14 = scalar_lea.hbm %s1464_s1, 6 }
  0x53   : > { %p925_p11 = scmp.ne.s32.totalorder %s918_s30, %s924_s22  ;;  %p929_p3 = scmp.lt.s32.totalorder %s918_s30, %s1464_s1 }
  0x54   : > { %p930_p4 = scmp.lt.s32.totalorder %s928_s14, %s924_s22 }
  0x55   : > { %p926_p13 = pnand %p925_p11, %p1252_p5 }
  0x56   : > { %p931_p7 = por %p930_p4, %p929_p3 }
  0x57   : > { %p927_p2 = pneg %p926_p13 }
  0x59   : > { %p932_p8 = pnand %p931_p7, %p927_p2 }
  0x5b   : > { %935 = shalt.err (!%p932_p8)
}
  0x5c   : > { %s936_s6 = sshra.s32 %s226_s5, 4  ;;  %s1102_s7 = smov [#allocation5]   ;;  %s937_s6 = int_to_ptr.vmem [resolvable:$true] %s936_s6 }
  0x5d   : > { %s943_s8 = scalar_lea.vmem %s937_s6, %s919_s9  ;;  %s947_s20 = scalar_lea.vmem %s1102_s7, 8 }
  0x5e   : > { %p944_p12 = scmp.ne.s32.totalorder %s937_s6, %s943_s8  ;;  %p949_p10 = scmp.lt.s32.totalorder %s947_s20, %s943_s8 }
  0x60   : > { %p945_p0 = pnand %p944_p12, %p1252_p5 }
  0x62   : > { %p946_p1 = pneg %p945_p0 }
  0x64   : > { %p951_p11 = pnand %p949_p10, %p946_p1 }
  0x66   : > { %954 = shalt.err (!%p951_p11)
}
  0x67   : > { %s1485_s30 = sshll.u32 %s1504_s23, 5 }
  0x68   : > { %228 = dma.hbm_to_vmem [thread:$0]  (%p1252_p5), %s224_s11, %s1485_s30, %s226_s5, %s1249_s0  }
  0x69 PF: > { %p792_p13 = scmp.ge.s32.totalorder %s1097_s18, 1  ;;  %p230_p2 = scmp.lt.s32.totalorder %s1097_s18, 3 }
  0x6b   : > { %p231_p3 = pnand %p792_p13, %p230_p2 }
  0x6c   : > { %s1284_s9 = sand.u32 (!%p231_p3), 1, %s1089_s16  }
  0x6d   : > { %234 = sbr.rel (%p231_p3) target bundleno = 412 (0x19c), region = 28  ;;  %s793_s20 = sshll.u32 (!%p231_p3), %s1284_s9, 4 }
  0x6e   : > { %s237_s25 = scalar_lea.sflag (!%p231_p3), [#allocation3], %s1284_s9  ;;  %s240_s22 = scalar_lea.vmem (!%p231_p3), [#allocation2], %s793_s20 }
  0x72   : > { %1068 = dma.done.wait (%p1174_p6), %s237_s25, 256  }
  0x73   : > { %1070 = vsyncadd (%p1174_p6), %s237_s25, 4294967040  ;;  %s794_s0 = sshll.u32 %s1284_s9, 2  ;;  %s247_s23 = scalar_lea.sflag [#allocation6], %s1284_s9 }
  0x74   : > { %s1296_s11 = scalar_lea.vmem [#allocation5], %s794_s0 }
  0x75   : > { %1072 = dma.done.wait (%p1174_p6), %s247_s23, 64  }
  0x76   : > { %1074 = vsyncadd (%p1174_p6), %s247_s23, 4294967232  ;;  %v304_v0 = vld [vmem:[%s240_s22] sm:$0xff]  ;;  %v305_v1 = vld [vmem:[%s240_s22 + $0x8] sm:$0xff]  ;;  %vm320_vm0 = vcmask 1043456   ;;  %vm425_vm1 = vcmask 1041409   ;;  %vm427_vm2 = vcmask 1043459   ;;  %v414_v50 = vlaneseq }
  0x77   : > { %309 = vst [vmem:[#allocation1] ss:$2 sm:$0xff] %v304_v0  ;;  %v1309_v42 = vld [vmem:[%s1296_s11] sm:$0xf]  ;;  %vm429_vm3 = vcmask 1042433   ;;  %vm419_vm4 = vcmask 1040384  }
  0x78   : > { %313 = vst [vmem:[#allocation1 + $0x10] ss:$2 sm:$0xff] %v305_v1  ;;  %v416_v43 = vrot.slane %v1309_v42, 1  ;;  %v417_v44 = vrot.slane %v1309_v42, 2  ;;  %v418_v45 = vrot.slane %v1309_v42, 3  ;;  %vm421_vm5 = vcmask 1042434  }
  0x79   : > { %vm423_vm6 = vcmask 1041408   ;;  %v415_v54 = vshrl.u32 %v414_v50, 7  ;;  %s796_s26 = sshll.u32 %s1152_s19, 8  ;;  %v1319_v56 = vand.u32 127, %v414_v50  ;;  %vm494_vm13 = vcmp.ne.s32.totalorder %v1309_v42, 255  ;;  %s1354_s5 = scalar_lea.vmem [#allocation7], %s794_s0 }
  0x7a   : > { %v426_v48 = vsel %vm425_vm1, %v1309_v42, %v416_v43  ;;  %v428_v49 = vsel %vm427_vm2, %v417_v44, %v418_v45  ;;  %v420_v52 = vsel %vm419_vm4, %v1309_v42, %v416_v43  ;;  %v422_v53 = vsel %vm421_vm5, %v417_v44, %v418_v45  ;;  %s575_s13 = sand.u32 1, %s1152_s19   ;;  %s1473_s12 = scalar_lea.vmem [#allocation8], %s1284_s9 }
  0x7b   : > { %v430_v51 = vsel %vm429_vm3, %v426_v48, %v428_v49  ;;  %v424_v61 = vsel %vm423_vm6, %v420_v52, %v422_v53  ;;  %vm520_vm15 = vcmask 1045509   ;;  %s1472_s14 = scalar_lea.vmem [#allocation10], %s1284_s9  ;;  %s571_s10 = scalar_lea.sflag [#allocation4], %s1284_s9 }
  0x7c   : > { %v431_v55 = vrot.slane %v430_v51, 1  ;;  %s1371_s29 = scalar_lea.sflag [#allocation9], %s575_s13  ;;  %s799_s6 = sshll.u32 (%p1181_p9), %s1152_s19, 1 }
  0x7d   : > { %s587_s8 = ssub.s32 (%p1181_p9), 3, %s799_s6 }
  0x7e   : > { %v310_v2 = vld.sshfl [vmem:[#allocation1] sm:$0xff pattern:$0x75316420]  ;;  %v311_v3 = vld.sshfl [vmem:[#allocation1 + $0x8] sm:$0xff pattern:$0x75316420] }
  0x7f   : > { %v314_v4 = vld.sshfl [vmem:[#allocation1 + $0x10] sm:$0xff pattern:$0x75316420]  ;;  %v315_v5 = vld.sshfl [vmem:[#allocation1 + $0x18] sm:$0xff pattern:$0x75316420] }
  0x80   : > { %v321_v6 = vsel %vm320_vm0, %v310_v2, -inf  ;;  %v328_v7 = vsel %vm320_vm0, %v311_v3, -inf  ;;  %v335_v8 = vsel %vm320_vm0, %v314_v4, -inf  ;;  %v342_v9 = vsel %vm320_vm0, %v315_v5, -inf  ;;  %p588_p6 = scmp.lt.s32.totalorder (%p1181_p9), %s587_s8, 2 }
  0x81   : > { %v322_v10 = vrot.slane %v321_v6, 4  ;;  %v329_v11 = vrot.slane %v328_v7, 4  ;;  %v336_v12 = vrot.slane %v335_v8, 4  ;;  %v343_v13 = vrot.slane %v342_v9, 4 }
  0x83   : > { %v323_v14 = vmax.f32 %v321_v6, %v322_v10  ;;  %v330_v15 = vmax.f32 %v328_v7, %v329_v11  ;;  %v337_v16 = vmax.f32 %v335_v8, %v336_v12  ;;  %v344_v17 = vmax.f32 %v342_v9, %v343_v13 }
  0x84   : > { %v432_v6 = vperm.slane %v424_v61, 0  ;;  %v433_v7 = vperm.slane %v424_v61, 1  ;;  %v434_v8 = vperm.slane %v431_v55, 0  ;;  %v435_v9 = vperm.slane %v431_v55, 1 }
  0x85   : > { %v324_v18 = vrot.slane %v323_v14, 2  ;;  %v331_v19 = vrot.slane %v330_v15, 2  ;;  %v338_v20 = vrot.slane %v337_v16, 2  ;;  %v345_v21 = vrot.slane %v344_v17, 2 }
  0x86   : > { %vm1327_vm7 = vcmp.eq.s32.totalorder %v415_v54, %v432_v6  ;;  %vm1331_vm8 = vcmp.eq.s32.totalorder %v415_v54, %v433_v7  ;;  %vm438_vm9 = vcmp.eq.s32.totalorder %v415_v54, %v434_v8  ;;  %vm439_vm10 = vcmp.eq.s32.totalorder %v415_v54, %v435_v9 }
  0x87   : > { %v325_v22 = vmax.f32 %v323_v14, %v324_v18  ;;  %v332_v23 = vmax.f32 %v330_v15, %v331_v19  ;;  %v339_v24 = vmax.f32 %v337_v16, %v338_v20  ;;  %v346_v25 = vmax.f32 %v344_v17, %v345_v21 }
  0x88   : > { %v488_v14 = vadd.s32 128, %v1319_v56  ;;  %v489_v15 = vstv %s796_s26 }
  0x89   : > { %v326_v26 = vrot.slane %v325_v22, 1  ;;  %v333_v27 = vrot.slane %v332_v23, 1  ;;  %v340_v28 = vrot.slane %v339_v24, 1  ;;  %v347_v29 = vrot.slane %v346_v25, 1 }
  0x8a   : > { %v490_v61 = vadd.s32 %v489_v15, %v1319_v56 }
  0x8b   : > { %v327_v30 = vmax.f32 %v325_v22, %v326_v26  ;;  %v334_v31 = vmax.f32 %v332_v23, %v333_v27  ;;  %v341_v32 = vmax.f32 %v339_v24, %v340_v28  ;;  %v348_v33 = vmax.f32 %v346_v25, %v347_v29 }
  0x8c   : > { %vm492_vm12 = vcmp.lt.s32.totalorder %v490_v61, 384 }
  0x8d   : > { %v353_v34 = vrot.slane %v334_v31, 4  ;;  %v354_v35 = vrot.slane %v348_v33, 4 }
  0x8f   : > { %v355_v36 = vsel %vm320_vm0, %v327_v30, %v353_v34  ;;  %v356_v37 = vsel %vm320_vm0, %v341_v32, %v354_v35  ;;  %v491_v30 = vadd.s32 %v489_v15, %v488_v14 }
  0x90   : > { %v359_v38 = vsub.f32 %v304_v0, %v355_v36  ;;  %v360_v39 = vsub.f32 %v305_v1, %v356_v37 }
  0x91   : > { %vm493_vm11 = vcmp.lt.s32.totalorder %v491_v30, 384 }
  0x92   : > { %v361_v40 = vmul.f32 1.442695, %v359_v38  ;;  %v363_v41 = vmul.f32 1.442695, %v360_v39 }
  0x94   : > { %866 = vpow2.f32 %v361_v40 }
  0x95   : > { %868 = vpow2.f32 %v363_v41 }
  0x9a   : > { %v867_v46 = vpop.eup %866 }
  0x9b   : > { %v869_v47 = vpop.eup %868  ;;  %367 = vst [vmem:[#allocation1] ss:$2 sm:$0xff] %v867_v46 }
  0x9c   : > { %371 = vst [vmem:[#allocation1 + $0x10] ss:$2 sm:$0xff] %v869_v47 }
  0xa2   : > { %v368_v57 = vld.sshfl [vmem:[#allocation1] sm:$0xff pattern:$0x75316420]  ;;  %v369_v58 = vld.sshfl [vmem:[#allocation1 + $0x8] sm:$0xff pattern:$0x75316420] }
  0xa3   : > { %v372_v59 = vld.sshfl [vmem:[#allocation1 + $0x10] sm:$0xff pattern:$0x75316420]  ;;  %v373_v60 = vld.sshfl [vmem:[#allocation1 + $0x18] sm:$0xff pattern:$0x75316420] }
  0xa4   : > { %v378_v62 = vsel %vm320_vm0, %v368_v57, 0.0  ;;  %v385_v63 = vsel %vm320_vm0, %v369_v58, 0.0  ;;  %v392_v0 = vsel %vm320_vm0, %v372_v59, 0.0  ;;  %v399_v1 = vsel %vm320_vm0, %v373_v60, 0.0  ;;  %442 = vst [vmem:[#allocation1] ss:$2 sm:$0xff] %v359_v38 }
  0xa5   : > { %v379_v2 = vrot.slane %v378_v62, 4  ;;  %v386_v3 = vrot.slane %v385_v63, 4  ;;  %v393_v4 = vrot.slane %v392_v0, 4  ;;  %v400_v5 = vrot.slane %v399_v1, 4  ;;  %446 = vst [vmem:[#allocation1 + $0x10] ss:$2 sm:$0xff] %v360_v39 }
  0xa7   : > { %v380_v10 = vadd.f32 %v379_v2, %v378_v62  ;;  %v387_v11 = vadd.f32 %v386_v3, %v385_v63  ;;  %v394_v12 = vadd.f32 %v393_v4, %v392_v0  ;;  %v401_v13 = vadd.f32 %v400_v5, %v399_v1 }
  0xa8   : > { %v1103_v4 = vmov 0  }
  0xa9   : > { %v381_v16 = vrot.slane %v380_v10, 2  ;;  %v388_v17 = vrot.slane %v387_v11, 2  ;;  %v395_v18 = vrot.slane %v394_v12, 2  ;;  %v402_v19 = vrot.slane %v401_v13, 2 }
  0xaa   : > { %v496_v5 = vsel %vm493_vm11, 1, %v1103_v4  ;;  %v495_v20 = vsel %vm492_vm12, 1, %v1103_v4 }
  0xab   : > { %v382_v22 = vadd.f32 %v381_v16, %v380_v10  ;;  %v389_v23 = vadd.f32 %v388_v17, %v387_v11  ;;  %v396_v24 = vadd.f32 %v395_v18, %v394_v12  ;;  %v403_v25 = vadd.f32 %v402_v19, %v401_v13  ;;  %v443_v26 = vld.sshfl [vmem:[#allocation1] sm:$0xff pattern:$0x75316420]  ;;  %v444_v27 = vld.sshfl [vmem:[#allocation1 + $0x8] sm:$0xff pattern:$0x75316420] }
  0xac   : > { %v447_v28 = vld.sshfl [vmem:[#allocation1 + $0x10] sm:$0xff pattern:$0x75316420]  ;;  %v448_v29 = vld.sshfl [vmem:[#allocation1 + $0x18] sm:$0xff pattern:$0x75316420] }
  0xad   : > { %v383_v31 = vrot.slane %v382_v22, 1  ;;  %v390_v32 = vrot.slane %v389_v23, 1  ;;  %v397_v33 = vrot.slane %v396_v24, 1  ;;  %v404_v34 = vrot.slane %v403_v25, 1 }
  0xae   : > { %v453_v35 = vsel %vm1327_vm7, %v443_v26, 0.0  ;;  %v454_v36 = vsel %vm1331_vm8, %v444_v27, 0.0  ;;  %v455_v37 = vsel %vm438_vm9, %v447_v28, 0.0  ;;  %v456_v38 = vsel %vm439_vm10, %v448_v29, 0.0 }
  0xaf   : > { %v384_v39 = vadd.f32 %v383_v31, %v382_v22  ;;  %v391_v40 = vadd.f32 %v390_v32, %v389_v23  ;;  %v398_v41 = vadd.f32 %v397_v33, %v396_v24  ;;  %v405_v43 = vadd.f32 %v404_v34, %v403_v25 }
  0xb0   : > { %v457_v44 = vsel %vm320_vm0, %v453_v35, 0.0  ;;  %v464_v45 = vsel %vm320_vm0, %v454_v36, 0.0  ;;  %v471_v46 = vsel %vm320_vm0, %v455_v37, 0.0  ;;  %v478_v47 = vsel %vm320_vm0, %v456_v38, 0.0 }
  0xb1   : > { %870 = vlog2.f32 %v384_v39  ;;  %v458_v48 = vrot.slane %v457_v44, 4  ;;  %v465_v49 = vrot.slane %v464_v45, 4  ;;  %v472_v50 = vrot.slane %v471_v46, 4 }
  0xb2   : > { %872 = vlog2.f32 %v391_v40  ;;  %v479_v51 = vrot.slane %v478_v47, 4  ;;  %v497_v19 = vrot.slane %v496_v5, 6  ;;  %vm522_vm0 = vcmask 1047559  }
  0xb3   : > { %874 = vlog2.f32 %v398_v41  ;;  %v459_v52 = vadd.f32 %v458_v48, %v457_v44  ;;  %v466_v53 = vadd.f32 %v465_v49, %v464_v45  ;;  %v473_v54 = vadd.f32 %v472_v50, %v471_v46 }
  0xb4   : > { %876 = vlog2.f32 %v405_v43  ;;  %v480_v55 = vadd.f32 %v479_v51, %v478_v47  ;;  %v498_v26 = vsel %vm423_vm6, %v495_v20, %v497_v19  ;;  %v1104_v36 = vmov 0.0  }
  0xb5   : > { %v460_v57 = vrot.slane %v459_v52, 2  ;;  %v467_v58 = vrot.slane %v466_v53, 2  ;;  %v474_v59 = vrot.slane %v473_v54, 2  ;;  %vm499_vm14 = vcmp.ne.s32.totalorder %v498_v26, 0 }
  0xb6   : > { %v481_v60 = vrot.slane %v480_v55, 2  ;;  %vm500_vm3 = vmand %vm494_vm13, %vm499_vm14 }
  0xb7   : > { %v871_v62 = vpop.eup %870  ;;  %v461_v63 = vadd.f32 %v460_v57, %v459_v52  ;;  %v468_v0 = vadd.f32 %v467_v58, %v466_v53  ;;  %v475_v1 = vadd.f32 %v474_v59, %v473_v54 }
  0xb8   : > { %v873_v2 = vpop.eup %872  ;;  %v482_v3 = vadd.f32 %v481_v60, %v480_v55  ;;  %v407_v12 = vmul.f32 0.6931472, %v871_v62 }
  0xb9   : > { %v875_v6 = vpop.eup %874  ;;  %v409_v7 = vmul.f32 0.6931472, %v873_v2  ;;  %v462_v8 = vrot.slane %v461_v63, 1  ;;  %v469_v9 = vrot.slane %v468_v0, 1  ;;  %v476_v10 = vrot.slane %v475_v1, 1 }
  0xba   : > { %v877_v11 = vpop.eup %876  ;;  %v411_v13 = vmul.f32 0.6931472, %v875_v6  ;;  %v483_v14 = vrot.slane %v482_v3, 1 }
  0xbb   : > { %v413_v16 = vmul.f32 0.6931472, %v877_v11  ;;  %v463_v56 = vadd.f32 %v462_v8, %v461_v63  ;;  %v470_v15 = vadd.f32 %v469_v9, %v468_v0  ;;  %v477_v17 = vadd.f32 %v476_v10, %v475_v1 }
  0xbc   : > { %v484_v18 = vadd.f32 %v483_v14, %v482_v3 }
  0xbd   : > { %v502_v21 = vsub.f32 %v409_v7, %v470_v15  ;;  %v501_v22 = vsub.f32 %v407_v12, %v463_v56  ;;  %v503_v23 = vsub.f32 %v411_v13, %v477_v17 }
  0xbe   : > { %v504_v24 = vsub.f32 %v413_v16, %v484_v18 }
  0xbf   : > { %v509_v25 = vrot.slane %v502_v21, 6 }
  0xc0   : > { %v510_v27 = vrot.slane %v504_v24, 6 }
  0xc1   : > { %v511_v28 = vsel %vm423_vm6, %v501_v22, %v509_v25 }
  0xc2   : > { %v512_v29 = vsel %vm423_vm6, %v503_v23, %v510_v27 }
  0xc3   : > { %v517_v30 = vrot.slane %v512_v29, 7 }
  0xc5   : > { %v518_v31 = vsel %vm425_vm1, %v517_v30, %v511_v28 }
  0xc6   : > { %v519_v32 = vsel %vm427_vm2, %v517_v30, %v518_v31 }
  0xc7   : > { %v521_v33 = vsel %vm520_vm15, %v517_v30, %v519_v32 }
  0xc8   : > { %v523_v34 = vsel %vm522_vm0, %v517_v30, %v521_v33 }
  0xc9   : > { %v525_v35 = vsel %vm500_vm3, %v523_v34, 0.0 }
  0xca   : > { %vm527_vm4 = vcmp.gt.f32.partialorder %v525_v35, 0.35667494  ;;  %526 = vst [vmem:[%s1354_s5] sm:$0xf] %v525_v35 }
  0xcb   : > { %vm528_vm5 = vmand %vm527_vm4, %vm499_vm14 }
  0xcc   : > { %v529_v42 = vsel %vm528_vm5, %v525_v35, 0.0  ;;  %v797_v37 = vsel %vm528_vm5, 1.0, %v1104_v36 }
  0xcd   : > { %531 = vst [vmem:[#allocation1] ss:$4 sm:$0xff] %v529_v42 }
  0xd4   : > { %v532_v38 = vld.sshfl [vmem:[#allocation1] sm:$0xff pattern:$0x73625140]  ;;  %v533_v39 = vld.sshfl [vmem:[#allocation1 + $0x8] sm:$0xff pattern:$0x73625140] }
  0xd5   : > { %v536_v40 = vsel %vm423_vm6, %v532_v38, 0.0  ;;  %v537_v41 = vsel %vm423_vm6, %v533_v39, 0.0  ;;  %552 = vst [vmem:[#allocation1] ss:$4 sm:$0xff] %v797_v37 }
  0xd6   : > { %v538_v43 = vadd.f32 %v537_v41, %v536_v40 }
  0xd8   : > { %539 = vadd.xlane.f32.xlu0 %v538_v43 }
  0xdc   : > { %v553_v44 = vld.sshfl [vmem:[#allocation1] sm:$0xff pattern:$0x73625140]  ;;  %v554_v45 = vld.sshfl [vmem:[#allocation1 + $0x8] sm:$0xff pattern:$0x73625140] }
  0xdd   : > { %v557_v46 = vsel %vm423_vm6, %v553_v44, 0.0  ;;  %v558_v47 = vsel %vm423_vm6, %v554_v45, 0.0 }
  0xde   : > { %v559_v48 = vadd.f32 %v558_v47, %v557_v46 }
  0xe0   : > { %560 = vadd.xlane.f32.xlu0 %v559_v48 }
 0x14b   : > { %v540_v49 = vpop.xlane.xlu0 %539 }
 0x14c   : > { %v541_v50 = vsel %vm423_vm6, %v540_v49, 0.0 }
 0x14d   : > { %v542_v51 = vrot.slane %v541_v50, 4 }
 0x14f   : > { %v543_v52 = vadd.f32 %v542_v51, %v541_v50 }
 0x151   : > { %v544_v53 = vrot.slane %v543_v52, 2 }
 0x153   : > { %v545_v54 = vadd.f32 %v544_v53, %v543_v52  ;;  %v561_v55 = vpop.xlane.xlu0 %560 }
 0x154   : > { %v562_v57 = vsel %vm423_vm6, %v561_v55, 0.0 }
 0x155   : > { %v546_v58 = vrot.slane %v545_v54, 1  ;;  %v563_v59 = vrot.slane %v562_v57, 4 }
 0x157   : > { %v547_v60 = vadd.f32 %v546_v58, %v545_v54  ;;  %v564_v61 = vadd.f32 %v563_v59, %v562_v57 }
 0x159   : > { %548 = vst [vmem:[%s1473_s12] sm:$0x1] %v547_v60  ;;  %v565_v62 = vrot.slane %v564_v61, 2 }
 0x15b   : > { %v566_v63 = vadd.f32 %v565_v62, %v564_v61 }
 0x15d   : > { %v567_v0 = vrot.slane %v566_v63, 1  ;;  %585 = sbr.rel (!%p1181_p9) target bundleno = 385 (0x181), region = 40 }
 0x15f   : > { %v568_v1 = vadd.f32 %v567_v0, %v566_v63 }
 0x161   : > { %569 = vst [vmem:[%s1472_s14] sm:$0x1] %v568_v1 }
 0x162   : > { %s1506_s8 = smov (!%p588_p6, %s587_s8), 2 }
 0x163   : > { %s800_s7 = sshll.u32 %s1506_s8, 1 }
 0x164   : > { %s591_s30 = ssub.s32 4, %s800_s7 }
 0x165   : > { %s592_s20 = sshll.u32 %s591_s30, 4 }
 0x166   : > { %593 = vsyncadd %s571_s10, %s592_s20  ;;  %p1381_p5 = scmp.ne.s32.totalorder %s800_s7, 0  ;;  %s811_s22 = sshll.u32 %s1152_s19, 2 }
 0x167   : > { %s596_s11 = scalar_lea.hbm %s1465_s2, %s811_s22  ;;  %s1474_s26 = sshll.u32 %s1506_s8, 5 }
 0x168   : > { %s599_s13 = sshll.u32 %s1354_s5, 4  ;;  %s601_s6 = sshll.u32 %s596_s11, 4  ;;  %s600_s13 = int_to_ptr.vmem [resolvable:$true] %s599_s13  ;;  %s602_s6 = int_to_ptr.hbm [resolvable:$true] %s601_s6 }
 0x169   : > { %s956_s30 = sshra.s32 %s600_s13, 4  ;;  %s958_s20 = sshrl.u32 %s1474_s26, 4  ;;  %s957_s30 = int_to_ptr.vmem [resolvable:$true] %s956_s30 }
 0x16a   : > { %s963_s14 = scalar_lea.vmem %s957_s30, %s958_s20  ;;  %s1105_s7 = smov [#allocation7]  }
 0x16b   : > { %p964_p4 = scmp.ne.s32.totalorder %s957_s30, %s963_s14  ;;  %s967_s12 = scalar_lea.vmem %s1105_s7, 8 }
 0x16c   : > { %p969_p12 = scmp.lt.s32.totalorder %s967_s12, %s963_s14 }
 0x16d   : > { %p965_p7 = pnand %p964_p4, %p1381_p5 }
 0x16f   : > { %p966_p8 = pneg %p965_p7 }
 0x171   : > { %p971_p0 = pnand %p969_p12, %p966_p8 }
 0x173   : > { %974 = shalt.err (!%p971_p0)
}
 0x174   : > { %s975_s22 = sshra.s32 %s602_s6, 4  ;;  %s986_s11 = scalar_lea.hbm %s1465_s2, 6  ;;  %s976_s22 = int_to_ptr.hbm [resolvable:$true] %s975_s22 }
 0x175   : > { %s982_s5 = scalar_lea.hbm %s976_s22, %s958_s20  ;;  %p987_p13 = scmp.lt.s32.totalorder %s976_s22, %s1465_s2 }
 0x176   : > { %p983_p1 = scmp.ne.s32.totalorder %s976_s22, %s982_s5  ;;  %p988_p2 = scmp.lt.s32.totalorder %s986_s11, %s982_s5 }
 0x178   : > { %p984_p10 = pnand %p983_p1, %p1381_p5  ;;  %p989_p3 = por %p988_p2, %p987_p13 }
 0x17a   : > { %p985_p11 = pneg %p984_p10 }
 0x17c   : > { %p990_p6 = pnand %p989_p3, %p985_p11 }
 0x17e   : > { %993 = shalt.err (!%p990_p6)
}
 0x17f   : > { %s1491_s12 = sshll.u32 %s1506_s8, 5 }
 0x180   : > { %604 = dma.vmem_to_hbm [thread:$0]  (%p1381_p5), %s600_s13, %s1491_s12, %s602_s6, %s571_s10  }
 0x181 PF: > { %s610_s26 = scalar_lea.hbm %s1466_s3, %s1152_s19  ;;  %s1492_s7 = scalar_lea.vmem [#allocation8], %s1284_s9 }
 0x182   : > { %s612_s22 = sshll.u32 %s1492_s7, 4  ;;  %s614_s5 = sshll.u32 %s610_s26, 4  ;;  %s613_s22 = int_to_ptr.vmem [resolvable:$true] %s612_s22  ;;  %s615_s5 = int_to_ptr.hbm [resolvable:$true] %s614_s5 }
 0x183   : > { %s623_s23 = scalar_lea.hbm %s1467_s4, %s1152_s19  ;;  %s1009_s8 = sshra.s32 %s615_s5, 4  ;;  %s1010_s8 = int_to_ptr.hbm [resolvable:$true] %s1009_s8 }
 0x184   : > { %s1011_s10 = scalar_lea.hbm %s1010_s8, 1  ;;  %s1015_s11 = scalar_lea.hbm %s1466_s3, 2 }
 0x185   : > { %p1012_p5 = scmp.ne.s32.totalorder %s1010_s8, %s1011_s10  ;;  %p1016_p8 = scmp.lt.s32.totalorder %s1010_s8, %s1466_s3 }
 0x186   : > { %p1017_p12 = scmp.lt.s32.totalorder %s1015_s11, %s1011_s10 }
 0x187   : > { %p1013_p4 = pnand %p1012_p5, %p1181_p9 }
 0x188   : > { %p1018_p0 = por %p1017_p12, %p1016_p8 }
 0x189   : > { %p1014_p7 = pneg %p1013_p4 }
 0x18b   : > { %p1019_p1 = pnand %p1018_p0, %p1014_p7 }
 0x18d   : > { %1022 = shalt.err (!%p1019_p1)
}
 0x18e   : > { %814 = dma.vmem_to_hbm [thread:$0]  (%p1181_p9), %s613_s22, 16, %s615_s5, %s1371_s29  }
 0x18f   : > { %s1493_s19 = scalar_lea.vmem [#allocation10], %s1284_s9  ;;  %s627_s20 = sshll.u32 %s623_s23, 4  ;;  %s628_s20 = int_to_ptr.hbm [resolvable:$true] %s627_s20 }
 0x190   : > { %s625_s14 = sshll.u32 %s1493_s19, 4  ;;  %s1037_s26 = sshra.s32 %s628_s20, 4  ;;  %s626_s14 = int_to_ptr.vmem [resolvable:$true] %s625_s14  ;;  %s1038_s26 = int_to_ptr.hbm [resolvable:$true] %s1037_s26 }
 0x191   : > { %s1039_s7 = scalar_lea.hbm %s1038_s26, 1  ;;  %s1043_s8 = scalar_lea.hbm %s1467_s4, 2 }
 0x192   : > { %p1040_p10 = scmp.ne.s32.totalorder %s1038_s26, %s1039_s7  ;;  %p1044_p2 = scmp.lt.s32.totalorder %s1038_s26, %s1467_s4 }
 0x193   : > { %p1045_p3 = scmp.lt.s32.totalorder %s1043_s8, %s1039_s7 }
 0x194   : > { %p1041_p11 = pnand %p1040_p10, %p1181_p9 }
 0x195   : > { %p1046_p6 = por %p1045_p3, %p1044_p2 }
 0x196   : > { %p1042_p13 = pneg %p1041_p11 }
 0x198   : > { %p1047_p5 = pnand %p1046_p6, %p1042_p13 }
 0x19a   : > { %1050 = shalt.err (!%p1047_p5)
}
 0x19b   : > { %815 = dma.vmem_to_hbm [thread:$0]  (%p1181_p9), %s626_s14, 16, %s628_s20, %s1371_s29  }
 0x19c PF: > { %s639_s9 = sand.u32 1, %s1085_s15   ;;  %p1494_p4 = scmp.ne.s32.totalorder %s1479_s28, 0 }
 0x19d   : > { %p1495_p7 = scmp.ge.s32.totalorder %s1097_s18, 2  ;;  %s640_s22 = scalar_lea.sflag [#allocation4], %s639_s9 }
 0x19f   : > { %p820_p8 = pnand %p1495_p7, %p1494_p4 }
 0x1a1   : > { %p821_p12 = pneg %p820_p8 }
 0x1a3   : > { %1076 = dma.done.wait (%p821_p12), %s640_s22, 64  }
 0x1a4   : > { %1078 = vsyncadd (%p821_p12), %s640_s22, 4294967232  ;;  %s1496_s5 = sadd.s32 4294967294, %s1097_s18  }
 0x1a5   : > { %s649_s23 = sand.u32 1, %s1496_s5  }
 0x1a6   : > { %s650_s6 = scalar_lea.sflag [#allocation9], %s649_s23 }
 0x1a7   : > { %1080 = dma.done.wait (%p821_p12), %s650_s6, 32  }
 0x1a8   : > { %1082 = vsyncadd (%p821_p12), %s650_s6, 4294967264  ;;  %p24_p9 = scmp.ge.s32.totalorder %s1156_s21, 4   ;;  %s1497_s15 = smov %s1089_s16 }
 0x1a9   : > { %s1498_s16 = smov %s1093_s17  ;;  %s1499_s17 = smov %s1168_s24 }
 0x1aa   : > { %s1500_s18 = smov %s1156_s21  ;;  %26 = sbr.rel (!%p24_p9) target bundleno = 11 (0xb), region = 121 }
 0x1af   :  { %664 = vsyncpa [#allocation3], 1 }
 0x1b0   :  { %666 = vsyncpa [#allocation3 + $0x1], 1 }
 0x1b1   :  { %667 = vsyncpa [#allocation6], 1 }
 0x1b2   :  { %669 = vsyncpa [#allocation6 + $0x1], 1 }
 0x1b3   :  { %670 = vsyncpa [#allocation4], 1 }
 0x1b4   :  { %672 = vsyncpa [#allocation4 + $0x1], 1 }
 0x1b5   :  { %673 = vsyncpa [#allocation9], 1 }
 0x1b6   :  { %675 = vsyncpa [#allocation9 + $0x1], 1 }

</bundles_post_ra>
